<compile_context>
chip_gen: v7x
topology: tpu7x:2x2x1
jax: 0.10.0
libtpu: 0.0.40
codegen_flags: <defaults>
</compile_context>

<pallas_src>
import functools

import jax
import jax.numpy as jnp
from jax import lax
from jax.experimental import pallas as pl
from jax.experimental.pallas import tpu as pltpu

LANE = 128
BN_EPS = 1e-5
NEG_SLOPE = 0.2
TM_CAP = 1024        # max rows per tile in the two-pass (large-M) path
FUSE_M_MAX = 512     # single-launch fused path when the whole block fits one tile


def _round_up(x, m):
    return (x + m - 1) // m * m


def _vmem_capacity():
    try:
        return int(pltpu.get_tpu_info().vmem_capacity_bytes)
    except Exception:
        return 64 * 1024 * 1024   # conservative fallback (v7x physical per-core VMEM)


def _mosaic_params(semantics, need_bytes, vmem_cap):
    limit = max(int(need_bytes) + (8 << 20), 32 << 20)
    limit = min(limit, max(vmem_cap - (8 << 20), 32 << 20))
    return pltpu.CompilerParams(dimension_semantics=semantics,
                                vmem_limit_bytes=int(limit))


def _vmem_spec():
    return pl.BlockSpec(memory_space=pltpu.MemorySpace.VMEM)


# ---------------------------------------------------------------- kernels ---

def _fused_block_kernel(patches_ref, w_ref, gamma_ref, beta_ref, out_ref,
                        *, m_valid, eps):
    """Single-tile block: conv matmul + BN (batch stats) + LeakyReLU, one launch."""
    y = jnp.dot(patches_ref[...], w_ref[...], preferred_element_type=jnp.float32)
    inv_m = 1.0 / m_valid
    mean = jnp.sum(y, axis=0, keepdims=True) * inv_m          # pad rows are exact 0
    rows = lax.broadcasted_iota(jnp.int32, y.shape, 0)
    diff = jnp.where(rows < m_valid, y - mean, 0.0)           # mask pad rows
    var = jnp.sum(diff * diff, axis=0, keepdims=True) * inv_m  # biased, centered
    scale = gamma_ref[...] * lax.rsqrt(var + eps)
    shift = beta_ref[...] - mean * scale
    z = y * scale + shift
    out_ref[...] = jnp.where(z >= 0.0, z, NEG_SLOPE * z).astype(out_ref.dtype)


def _fused_block_head_kernel(patches_ref, w_ref, gamma_ref, beta_ref,
                             pool_ref, lw_ref, lb_ref, out_ref, *, m_valid, eps):
    """Last block fused with the head: conv + BN + LeakyReLU + avgpool + linear + sigmoid."""
    y = jnp.dot(patches_ref[...], w_ref[...], preferred_element_type=jnp.float32)
    inv_m = 1.0 / m_valid
    mean = jnp.sum(y, axis=0, keepdims=True) * inv_m
    rows = lax.broadcasted_iota(jnp.int32, y.shape, 0)
    diff = jnp.where(rows < m_valid, y - mean, 0.0)
    var = jnp.sum(diff * diff, axis=0, keepdims=True) * inv_m
    scale = gamma_ref[...] * lax.rsqrt(var + eps)
    shift = beta_ref[...] - mean * scale
    z = y * scale + shift
    act = jnp.where(z >= 0.0, z, NEG_SLOPE * z)
    # pool matrix zeroes pad rows and divides by Ho*Wo -> AdaptiveAvgPool2d(1)+Flatten
    pooled = jnp.dot(pool_ref[...], act, preferred_element_type=jnp.float32)   # (N, C_pad)
    logit = jnp.dot(pooled, lw_ref[...], preferred_element_type=jnp.float32) + lb_ref[...]
    out_ref[...] = jax.nn.sigmoid(logit)


def _mm_partial_kernel(patches_ref, w_ref, y_ref, part_ref):
    """Pass 1 (multi-tile path): MXU matmul + per-tile partial BN statistics.

    No resident accumulator -> every grid step is independent ("parallel",
    megacore-sharded on v7x). y is written in bf16; stats come from the f32
    MXU result. NOTE: whole-tile sums may spill vregs at tm=1024 — per review,
    only chunk the reduction if the bundle dump shows spills on the ld/st slots.
    """
    y = jnp.dot(patches_ref[...], w_ref[...], preferred_element_type=jnp.float32)
    y_ref[...] = y.astype(y_ref.dtype)
    s = jnp.sum(y, axis=0, keepdims=True)
    ss = jnp.sum(y * y, axis=0, keepdims=True)
    part_ref[...] = jnp.concatenate([s, ss], axis=0)[None]     # (1, 2, C_pad)


def _bn_act_kernel(y_ref, part_ref, gamma_ref, beta_ref, out_ref, *, inv_m, eps):
    """Pass 2: finalize global stats from the tiny partials tensor, normalize + LeakyReLU."""
    part = part_ref[...]                                        # (grid_m, 2, C_pad)
    mean = jnp.sum(part[:, 0:1, :], axis=0) * inv_m             # (1, C_pad)
    msq = jnp.sum(part[:, 1:2, :], axis=0) * inv_m
    var = jnp.maximum(msq - mean * mean, 0.0)                   # biased variance
    scale = gamma_ref[...] * lax.rsqrt(var + eps)
    shift = beta_ref[...] - mean * scale
    z = y_ref[...].astype(jnp.float32) * scale + shift
    out_ref[...] = jnp.where(z >= 0.0, z, NEG_SLOPE * z).astype(out_ref.dtype)


def _head_kernel(x_ref, w_ref, b_ref, out_ref):
    """Fallback head (used only if the last block took the multi-tile path)."""
    pooled = jnp.mean(x_ref[...].astype(jnp.float32), axis=1)
    logit = jnp.dot(pooled, w_ref[...], preferred_element_type=jnp.float32) + b_ref[...]
    out_ref[...] = jax.nn.sigmoid(logit)


# ------------------------------------------------------------------- glue ---

def _im2col(x_nhwc, k=4, s=2, p=1):
    N, H, W, C = x_nhwc.shape
    Ho = (H + 2 * p - k) // s + 1
    Wo = (W + 2 * p - k) // s + 1
    xp = jnp.pad(x_nhwc, ((0, 0), (p, p), (p, p), (0, 0)))
    cols = []
    for kh in range(k):
        for kw in range(k):
            cols.append(xp[:, kh:kh + s * Ho:s, kw:kw + s * Wo:s, :])
    patches = jnp.stack(cols, axis=3)                  # (N, Ho, Wo, k*k, C)
    patches = jnp.transpose(patches, (0, 1, 2, 4, 3))  # K ordered (Cin, kh, kw) like torch
    patches = patches.reshape(N * Ho * Wo, C * k * k)
    return patches, (N, Ho, Wo)


def _conv_block_fused(patches, w_mat, gamma_p, beta_p, M, M8, K, C_pad,
                      N, Ho, Wo, vmem_cap, head_params):
    patches_b = jnp.pad(patches, ((0, M8 - M), (0, 0))).astype(jnp.bfloat16)
    vspec = _vmem_spec()
    flops = 2 * M8 * K * C_pad

    if head_params is None:
        need = 2 * (patches_b.size * 2 + w_mat.size * 2 + M8 * C_pad * 2) + 4 * M8 * C_pad
        out = pl.pallas_call(
            functools.partial(_fused_block_kernel, m_valid=M, eps=BN_EPS),
            out_shape=jax.ShapeDtypeStruct((M8, C_pad), jnp.bfloat16),
            in_specs=[vspec, vspec, vspec, vspec],
            out_specs=vspec,
            compiler_params=_mosaic_params(None, need, vmem_cap),
            cost_estimate=pl.CostEstimate(
                flops=int(flops), transcendentals=0,
                bytes_accessed=int(patches_b.size * 2 + w_mat.size * 2 + M8 * C_pad * 2)),
        )(patches_b, w_mat, gamma_p, beta_p)
        return out[:M].reshape(N, Ho, Wo, C_pad)   # padded channels are exactly 0

    lin_w, lin_b = head_params
    hw = Ho * Wo
    pool = (jnp.arange(M8)[None, :] // hw == jnp.arange(N)[:, None])
    pool = pool.astype(jnp.float32) / float(hw)        # zero columns on pad rows
    lw = jnp.pad(lin_w, ((0, C_pad - lin_w.shape[0]), (0, 0))).astype(jnp.float32)
    need = 2 * (patches_b.size * 2 + w_mat.size * 2 + pool.size * 4) + 8 * M8 * C_pad
    return pl.pallas_call(
        functools.partial(_fused_block_head_kernel, m_valid=M, eps=BN_EPS),
        out_shape=jax.ShapeDtypeStruct((N, 1), jnp.float32),
        in_specs=[vspec] * 7,
        out_specs=vspec,
        compiler_params=_mosaic_params(None, need, vmem_cap),
        cost_estimate=pl.CostEstimate(
            flops=int(flops + 2 * N * M8 * C_pad + 2 * N * C_pad),
            transcendentals=int(N),
            bytes_accessed=int(patches_b.size * 2 + w_mat.size * 2 + pool.size * 4)),
    )(patches_b, w_mat, gamma_p, beta_p, pool, lw, lin_b)


def _conv_block_two_pass(patches, w_mat, gamma_p, beta_p, M, M8, K, C_pad,
                         N, Ho, Wo, vmem_cap, tm_budget):
    # Prefer >= 2 tiles so the "parallel" axes actually shard across v7x cores.
    tm = min(TM_CAP, tm_budget, _round_up((M8 + 1) // 2, 16))
    tm = max(16, tm // 16 * 16)
    M_pad = _round_up(M, tm)
    grid_m = M_pad // tm

    patches_b = jnp.pad(patches, ((0, M_pad - M), (0, 0))).astype(jnp.bfloat16)

    if grid_m >= 3:
        try:   # deeper input pipelining; fall back gracefully if unsupported
            patches_spec = pl.BlockSpec((tm, K), lambda i: (i, 0),
                                        pipeline_mode=pl.Buffered(3))
        except TypeError:
            patches_spec = pl.BlockSpec((tm, K), lambda i: (i, 0))
    else:
        patches_spec = pl.BlockSpec((tm, K), lambda i: (i, 0))

    flops = 2 * M_pad * K * C_pad
    bytes1 = patches_b.size * 2 + w_mat.size * 2 + M_pad * C_pad * 2 + grid_m * 2 * C_pad * 4

    # ---- Pass 1: matmul + per-tile partial stats (fully parallel over M) ----
    y_b16, part = pl.pallas_call(
        _mm_partial_kernel,
        grid=(grid_m,),
        in_specs=[patches_spec,
                  pl.BlockSpec((K, C_pad), lambda i: (0, 0))],       # weights resident
        out_specs=[pl.BlockSpec((tm, C_pad), lambda i: (i, 0)),      # bf16 conv output
                   pl.BlockSpec((1, 2, C_pad), lambda i: (i, 0, 0))],  # per-tile [sum; sumsq]
        out_shape=[jax.ShapeDtypeStruct((M_pad, C_pad), jnp.bfloat16),
                   jax.ShapeDtypeStruct((grid_m, 2, C_pad), jnp.float32)],
        compiler_params=_mosaic_params(
            ("parallel",),
            3 * tm * 2 * K + 2 * tm * 2 * C_pad + 2 * w_mat.size * 2 + 4 * tm * C_pad,
            vmem_cap),
        cost_estimate=pl.CostEstimate(flops=int(flops), transcendentals=0,
                                      bytes_accessed=int(bytes1)),
    )(patches_b, w_mat)

    # ---- Pass 2: finalize global stats, normalize + LeakyReLU (parallel) ----
    bytes2 = 2 * M_pad * C_pad * 2 + part.size * 4 + 2 * C_pad * 4 * 2
    out = pl.pallas_call(
        functools.partial(_bn_act_kernel, inv_m=1.0 / M, eps=BN_EPS),
        grid=(grid_m,),
        in_specs=[pl.BlockSpec((tm, C_pad), lambda i: (i, 0)),
                  pl.BlockSpec((grid_m, 2, C_pad), lambda i: (0, 0, 0)),   # resident
                  pl.BlockSpec((1, C_pad), lambda i: (0, 0)),
                  pl.BlockSpec((1, C_pad), lambda i: (0, 0))],
        out_specs=pl.BlockSpec((tm, C_pad), lambda i: (i, 0)),
        out_shape=jax.ShapeDtypeStruct((M_pad, C_pad), jnp.bfloat16),
        compiler_params=_mosaic_params(("parallel",),
                                       4 * tm * 2 * C_pad + 2 * part.size * 4,
                                       vmem_cap),
        cost_estimate=pl.CostEstimate(flops=int(6 * M_pad * C_pad),
                                      transcendentals=int(C_pad),
                                      bytes_accessed=int(bytes2)),
    )(y_b16, part, gamma_p, beta_p)

    return out[:M].reshape(N, Ho, Wo, C_pad)   # padded channels are exactly 0


def conv_block(x_nhwc, w_oihw, gamma, beta, head_params=None):
    Cout, Cin, k, _ = w_oihw.shape
    # Drop zero-padded channels carried from the previous block before im2col.
    x_real = x_nhwc[..., :Cin]
    patches, (N, Ho, Wo) = _im2col(x_real, k=k, s=2, p=1)
    M, K = patches.shape                      # K = Cin*16, NOT padded to 128 in HBM
    C_pad = _round_up(Cout, LANE)             # lane floor so stores stay unmasked
    vmem_cap = _vmem_capacity()

    w_mat = jnp.transpose(w_oihw.reshape(Cout, K))                 # (K, Cout)
    w_mat = jnp.pad(w_mat, ((0, 0), (0, C_pad - Cout))).astype(jnp.bfloat16)
    gamma_p = jnp.pad(gamma, (0, C_pad - Cout)).reshape(1, C_pad).astype(jnp.float32)
    beta_p = jnp.pad(beta, (0, C_pad - Cout)).reshape(1, C_pad).astype(jnp.float32)

    M8 = _round_up(M, 8)
    # Per-tile row budget from the per-generation VMEM capacity.
    per_row = 2 * (2 * K) + 2 * (2 * C_pad) + 4 * C_pad
    tm_budget = max(16, (max(8 << 20, vmem_cap // 4) // per_row) // 16 * 16)

    if M8 <= min(FUSE_M_MAX, tm_budget):
        return _conv_block_fused(patches, w_mat, gamma_p, beta_p, M, M8, K, C_pad,
                                 N, Ho, Wo, vmem_cap, head_params)
    return _conv_block_two_pass(patches, w_mat, gamma_p, beta_p, M, M8, K, C_pad,
                                N, Ho, Wo, vmem_cap, tm_budget)


def head(x_nhwc, lin_w, lin_b):
    N, H, W, C_pad = x_nhwc.shape
    lw = jnp.pad(lin_w, ((0, C_pad - lin_w.shape[0]), (0, 0))).astype(jnp.float32)
    x = x_nhwc.reshape(N, H * W, C_pad)
    vspec = _vmem_spec()
    return pl.pallas_call(
        _head_kernel,
        out_shape=jax.ShapeDtypeStruct((N, 1), jnp.float32),
        in_specs=[vspec, vspec, vspec],
        out_specs=vspec,
        cost_estimate=pl.CostEstimate(flops=int(2 * N * H * W * C_pad + 2 * N * C_pad),
                                      transcendentals=int(N),
                                      bytes_accessed=int(x.size * 2 + lw.size * 4)),
    )(x, lw, lin_b)


# ------------------------------------------------------------- parameters ---

def init_params(key, fin, n_channels, n_blocks):
    n_in = [n_channels] + [fin * 2 ** i for i in range(n_blocks)]
    n_out = [fin * 2 ** i for i in range(n_blocks + 1)]
    params = {"blocks": []}
    for i in range(n_blocks + 1):
        key, wk = jax.random.split(key)
        fan_in = n_in[i] * 16
        w = jax.random.normal(wk, (n_out[i], n_in[i], 4, 4), jnp.float32) * (2.0 / fan_in) ** 0.5
        gamma = jnp.ones((n_out[i],), jnp.float32)   # BatchNorm2d default init
        beta = jnp.zeros((n_out[i],), jnp.float32)
        params["blocks"].append((w, gamma, beta))
    nfeats = n_out[-1]
    key, wk, bk = jax.random.split(key, 3)
    params["lin_w"] = jax.random.normal(wk, (nfeats, 1), jnp.float32) * (1.0 / nfeats) ** 0.5
    params["lin_b"] = jax.random.normal(bk, (1, 1), jnp.float32) * 0.01
    return params


def discriminator_forward(params, x_nchw):
    x = jnp.transpose(x_nchw, (0, 2, 3, 1))            # NCHW -> NHWC
    blocks = params["blocks"]
    n = len(blocks)
    for i, (w, gamma, beta) in enumerate(blocks):
        hp = (params["lin_w"], params["lin_b"]) if i == n - 1 else None
        x = conv_block(x, w, gamma, beta, head_params=hp)
    if x.ndim == 2:                                     # head fused into the last block
        return x
    return head(x, params["lin_w"], params["lin_b"])    # fallback (large last block)


# -------------------------------------------------------- pure-JAX reference

def reference_forward(params, x_nchw):
    x = x_nchw
    for (w, gamma, beta) in params["blocks"]:
        y = lax.conv_general_dilated(x, w, window_strides=(2, 2),
                                     padding=((1, 1), (1, 1)),
                                     dimension_numbers=("NCHW", "OIHW", "NCHW"))
        mean = jnp.mean(y, axis=(0, 2, 3), keepdims=True)
        var = jnp.var(y, axis=(0, 2, 3), keepdims=True)          # biased (train-mode BN)
        yh = (y - mean) * lax.rsqrt(var + BN_EPS)
        yh = gamma.reshape(1, -1, 1, 1) * yh + beta.reshape(1, -1, 1, 1)
        x = jnp.where(yh >= 0.0, yh, NEG_SLOPE * yh)
    pooled = jnp.mean(x, axis=(2, 3))
    logit = pooled @ params["lin_w"] + params["lin_b"]
    return jax.nn.sigmoid(logit)


# ------------------------------------------------------------------- main ---

if __name__ == "__main__":
    fwd = jax.jit(discriminator_forward)

    def run_case(fin, n_channels, n_blocks, N, H, W):
        key = jax.random.PRNGKey(0)
        key, xk = jax.random.split(key)
        x = jax.random.normal(xk, (N, n_channels, H, W), jnp.float32)
        params = init_params(key, fin, n_channels, n_blocks)
        y = jax.block_until_ready(fwd(params, x))
        y_ref = jax.block_until_ready(reference_forward(params, x))
        assert y.shape == (N, 1)
        assert bool(jnp.all((y >= 0.0) & (y <= 1.0)))
        err = float(jnp.max(jnp.abs(y - y_ref.astype(y.dtype))))
        assert err < 5e-2, f"max |err| vs reference = {err}"

    # Small config consistent with the module: fin=8, n_channels=1, n_blocks=2
    # -> channels 1 -> 8 -> 16 -> 32, spatial 16 -> 8 -> 4 -> 2 (fused path + fused head).
    run_case(fin=8, n_channels=1, n_blocks=2, N=2, H=16, W=16)
    # Larger spatial / wider channels to exercise the multi-tile two-pass path
    # (parallel pass-1 partial stats, Buffered(3) patch stream, C_pad = 256 head).
    run_case(fin=64, n_channels=1, n_blocks=2, N=2, H=128, W=128)

    print("KERNEL_OK")
</pallas_src>

<mosaic_0001>
module attributes {stable_mosaic.version = 11 : i64} {
  func.func @_fused_block_kernel(%arg0: memref<128x16xbf16, #tpu.memory_space<vmem>>, %arg1: memref<16x128xbf16, #tpu.memory_space<vmem>>, %arg2: memref<1x128xf32, #tpu.memory_space<vmem>>, %arg3: memref<1x128xf32, #tpu.memory_space<vmem>>, %arg4: memref<128x128xbf16, #tpu.memory_space<vmem>>) attributes {dimension_semantics = [], scalar_prefetch = 0 : i64, scratch_operands = 0 : i64, tpu.core_type = #tpu.core_type<tc>} {
    %c0 = arith.constant 0 : index
    %c0_0 = arith.constant 0 : index
    %0 = vector.load %arg0[%c0, %c0_0] : memref<128x16xbf16, #tpu.memory_space<vmem>>, vector<128x16xbf16>
    %c0_1 = arith.constant 0 : index
    %c0_2 = arith.constant 0 : index
    %1 = vector.load %arg1[%c0_1, %c0_2] : memref<16x128xbf16, #tpu.memory_space<vmem>>, vector<16x128xbf16>
    %cst = arith.constant dense<0.000000e+00> : vector<128x128xf32>
    %2 = tpu.matmul %0, %1, %cst {dimension_numbers = #tpu.dot_dimension_numbers<[1], [0], [0], [1], [0, 0, 1, 1], [], []>} : vector<128x16xbf16>, vector<16x128xbf16>, vector<128x128xf32> -> vector<128x128xf32>
    %cst_3 = arith.constant dense<0.000000e+00> : vector<128xf32>
    %3 = vector.multi_reduction <add>, %2, %cst_3 [0] : vector<128x128xf32> to vector<128xf32>
    %4 = vector.shape_cast %3 : vector<128xf32> to vector<1x128xf32>
    %cst_4 = arith.constant 7.812500e-03 : f32
    %5 = vector.broadcast %cst_4 : f32 to vector<1x128xf32>
    %6 = arith.mulf %4, %5 : vector<1x128xf32>
    %7 = tpu.iota {dimensions = array<i32: 0>} : vector<128x128xi32>
    %c128_i32 = arith.constant 128 : i32
    %8 = vector.broadcast %c128_i32 : i32 to vector<128x128xi32>
    %9 = arith.cmpi slt, %7, %8 : vector<128x128xi32>
    %10 = vector.broadcast %6 : vector<1x128xf32> to vector<128x128xf32>
    %11 = arith.subf %2, %10 : vector<128x128xf32>
    %cst_5 = arith.constant 0.000000e+00 : f32
    %12 = vector.broadcast %cst_5 : f32 to vector<128x128xf32>
    %13 = arith.select %9, %11, %12 : vector<128x128xi1>, vector<128x128xf32>
    %14 = arith.mulf %13, %13 : vector<128x128xf32>
    %cst_6 = arith.constant dense<0.000000e+00> : vector<128xf32>
    %15 = vector.multi_reduction <add>, %14, %cst_6 [0] : vector<128x128xf32> to vector<128xf32>
    %16 = vector.shape_cast %15 : vector<128xf32> to vector<1x128xf32>
    %cst_7 = arith.constant 7.812500e-03 : f32
    %17 = vector.broadcast %cst_7 : f32 to vector<1x128xf32>
    %18 = arith.mulf %16, %17 : vector<1x128xf32>
    %c0_8 = arith.constant 0 : index
    %c0_9 = arith.constant 0 : index
    %19 = vector.load %arg2[%c0_8, %c0_9] : memref<1x128xf32, #tpu.memory_space<vmem>>, vector<1x128xf32>
    %cst_10 = arith.constant 9.99999974E-6 : f32
    %20 = vector.broadcast %cst_10 : f32 to vector<1x128xf32>
    %21 = arith.addf %18, %20 : vector<1x128xf32>
    %22 = math.rsqrt %21 : vector<1x128xf32>
    %23 = arith.mulf %19, %22 : vector<1x128xf32>
    %c0_11 = arith.constant 0 : index
    %c0_12 = arith.constant 0 : index
    %24 = vector.load %arg3[%c0_11, %c0_12] : memref<1x128xf32, #tpu.memory_space<vmem>>, vector<1x128xf32>
    %25 = arith.mulf %6, %23 : vector<1x128xf32>
    %26 = arith.subf %24, %25 : vector<1x128xf32>
    %27 = vector.broadcast %23 : vector<1x128xf32> to vector<128x128xf32>
    %28 = arith.mulf %2, %27 : vector<128x128xf32>
    %29 = vector.broadcast %26 : vector<1x128xf32> to vector<128x128xf32>
    %30 = arith.addf %28, %29 : vector<128x128xf32>
    %cst_13 = arith.constant 0.000000e+00 : f32
    %31 = vector.broadcast %cst_13 : f32 to vector<128x128xf32>
    %32 = arith.cmpf oge, %30, %31 : vector<128x128xf32>
    %cst_14 = arith.constant 2.000000e-01 : f32
    %33 = vector.broadcast %cst_14 : f32 to vector<128x128xf32>
    %34 = arith.mulf %33, %30 : vector<128x128xf32>
    %35 = arith.select %32, %30, %34 : vector<128x128xi1>, vector<128x128xf32>
    %36 = arith.truncf %35 : vector<128x128xf32> to vector<128x128xbf16>
    %c0_15 = arith.constant 0 : index
    %c0_16 = arith.constant 0 : index
    %37 = vector.load %arg4[%c0_15, %c0_16] : memref<128x128xbf16, #tpu.memory_space<vmem>>, vector<128x128xbf16>
    tpu.vector_store %arg4[%c0_15, %c0_16], %36 {strides = array<i32>} : memref<128x128xbf16, #tpu.memory_space<vmem>>, vector<128x128xbf16>,
    return
  }
}

module attributes {stable_mosaic.version = 11 : i64} {
  func.func @_fused_block_kernel(%arg0: memref<32x128xbf16, #tpu.memory_space<vmem>>, %arg1: memref<128x128xbf16, #tpu.memory_space<vmem>>, %arg2: memref<1x128xf32, #tpu.memory_space<vmem>>, %arg3: memref<1x128xf32, #tpu.memory_space<vmem>>, %arg4: memref<32x128xbf16, #tpu.memory_space<vmem>>) attributes {dimension_semantics = [], scalar_prefetch = 0 : i64, scratch_operands = 0 : i64, tpu.core_type = #tpu.core_type<tc>} {
    %c0 = arith.constant 0 : index
    %c0_0 = arith.constant 0 : index
    %0 = vector.load %arg0[%c0, %c0_0] : memref<32x128xbf16, #tpu.memory_space<vmem>>, vector<32x128xbf16>
    %c0_1 = arith.constant 0 : index
    %c0_2 = arith.constant 0 : index
    %1 = vector.load %arg1[%c0_1, %c0_2] : memref<128x128xbf16, #tpu.memory_space<vmem>>, vector<128x128xbf16>
    %cst = arith.constant dense<0.000000e+00> : vector<32x128xf32>
    %2 = tpu.matmul %0, %1, %cst {dimension_numbers = #tpu.dot_dimension_numbers<[1], [0], [0], [1], [0, 0, 1, 1], [], []>} : vector<32x128xbf16>, vector<128x128xbf16>, vector<32x128xf32> -> vector<32x128xf32>
    %cst_3 = arith.constant dense<0.000000e+00> : vector<128xf32>
    %3 = vector.multi_reduction <add>, %2, %cst_3 [0] : vector<32x128xf32> to vector<128xf32>
    %4 = vector.shape_cast %3 : vector<128xf32> to vector<1x128xf32>
    %cst_4 = arith.constant 3.125000e-02 : f32
    %5 = vector.broadcast %cst_4 : f32 to vector<1x128xf32>
    %6 = arith.mulf %4, %5 : vector<1x128xf32>
    %7 = tpu.iota {dimensions = array<i32: 0>} : vector<32x128xi32>
    %c32_i32 = arith.constant 32 : i32
    %8 = vector.broadcast %c32_i32 : i32 to vector<32x128xi32>
    %9 = arith.cmpi slt, %7, %8 : vector<32x128xi32>
    %10 = vector.broadcast %6 : vector<1x128xf32> to vector<32x128xf32>
    %11 = arith.subf %2, %10 : vector<32x128xf32>
    %cst_5 = arith.constant 0.000000e+00 : f32
    %12 = vector.broadcast %cst_5 : f32 to vector<32x128xf32>
    %13 = arith.select %9, %11, %12 : vector<32x128xi1>, vector<32x128xf32>
    %14 = arith.mulf %13, %13 : vector<32x128xf32>
    %cst_6 = arith.constant dense<0.000000e+00> : vector<128xf32>
    %15 = vector.multi_reduction <add>, %14, %cst_6 [0] : vector<32x128xf32> to vector<128xf32>
    %16 = vector.shape_cast %15 : vector<128xf32> to vector<1x128xf32>
    %cst_7 = arith.constant 3.125000e-02 : f32
    %17 = vector.broadcast %cst_7 : f32 to vector<1x128xf32>
    %18 = arith.mulf %16, %17 : vector<1x128xf32>
    %c0_8 = arith.constant 0 : index
    %c0_9 = arith.constant 0 : index
    %19 = vector.load %arg2[%c0_8, %c0_9] : memref<1x128xf32, #tpu.memory_space<vmem>>, vector<1x128xf32>
    %cst_10 = arith.constant 9.99999974E-6 : f32
    %20 = vector.broadcast %cst_10 : f32 to vector<1x128xf32>
    %21 = arith.addf %18, %20 : vector<1x128xf32>
    %22 = math.rsqrt %21 : vector<1x128xf32>
    %23 = arith.mulf %19, %22 : vector<1x128xf32>
    %c0_11 = arith.constant 0 : index
    %c0_12 = arith.constant 0 : index
    %24 = vector.load %arg3[%c0_11, %c0_12] : memref<1x128xf32, #tpu.memory_space<vmem>>, vector<1x128xf32>
    %25 = arith.mulf %6, %23 : vector<1x128xf32>
    %26 = arith.subf %24, %25 : vector<1x128xf32>
    %27 = vector.broadcast %23 : vector<1x128xf32> to vector<32x128xf32>
    %28 = arith.mulf %2, %27 : vector<32x128xf32>
    %29 = vector.broadcast %26 : vector<1x128xf32> to vector<32x128xf32>
    %30 = arith.addf %28, %29 : vector<32x128xf32>
    %cst_13 = arith.constant 0.000000e+00 : f32
    %31 = vector.broadcast %cst_13 : f32 to vector<32x128xf32>
    %32 = arith.cmpf oge, %30, %31 : vector<32x128xf32>
    %cst_14 = arith.constant 2.000000e-01 : f32
    %33 = vector.broadcast %cst_14 : f32 to vector<32x128xf32>
    %34 = arith.mulf %33, %30 : vector<32x128xf32>
    %35 = arith.select %32, %30, %34 : vector<32x128xi1>, vector<32x128xf32>
    %36 = arith.truncf %35 : vector<32x128xf32> to vector<32x128xbf16>
    %c0_15 = arith.constant 0 : index
    %c0_16 = arith.constant 0 : index
    %37 = vector.load %arg4[%c0_15, %c0_16] : memref<32x128xbf16, #tpu.memory_space<vmem>>, vector<32x128xbf16>
    tpu.vector_store %arg4[%c0_15, %c0_16], %36 {strides = array<i32>} : memref<32x128xbf16, #tpu.memory_space<vmem>>, vector<32x128xbf16>,
    return
  }
}

module attributes {stable_mosaic.version = 11 : i64} {
  func.func @_fused_block_head_kernel(%arg0: memref<8x256xbf16, #tpu.memory_space<vmem>>, %arg1: memref<256x128xbf16, #tpu.memory_space<vmem>>, %arg2: memref<1x128xf32, #tpu.memory_space<vmem>>, %arg3: memref<1x128xf32, #tpu.memory_space<vmem>>, %arg4: memref<2x8xf32, #tpu.memory_space<vmem>>, %arg5: memref<128x1xf32, #tpu.memory_space<vmem>>, %arg6: memref<1x1xf32, #tpu.memory_space<vmem>>, %arg7: memref<2x1xf32, #tpu.memory_space<vmem>>) attributes {dimension_semantics = [], scalar_prefetch = 0 : i64, scratch_operands = 0 : i64, tpu.core_type = #tpu.core_type<tc>} {
    %c0 = arith.constant 0 : index
    %c0_0 = arith.constant 0 : index
    %0 = vector.load %arg0[%c0, %c0_0] : memref<8x256xbf16, #tpu.memory_space<vmem>>, vector<8x256xbf16>
    %c0_1 = arith.constant 0 : index
    %c0_2 = arith.constant 0 : index
    %1 = vector.load %arg1[%c0_1, %c0_2] : memref<256x128xbf16, #tpu.memory_space<vmem>>, vector<256x128xbf16>
    %cst = arith.constant dense<0.000000e+00> : vector<8x128xf32>
    %2 = tpu.matmul %0, %1, %cst {dimension_numbers = #tpu.dot_dimension_numbers<[1], [0], [0], [1], [0, 0, 1, 1], [], []>} : vector<8x256xbf16>, vector<256x128xbf16>, vector<8x128xf32> -> vector<8x128xf32>
    %cst_3 = arith.constant dense<0.000000e+00> : vector<128xf32>
    %3 = vector.multi_reduction <add>, %2, %cst_3 [0] : vector<8x128xf32> to vector<128xf32>
    %4 = vector.shape_cast %3 : vector<128xf32> to vector<1x128xf32>
    %cst_4 = arith.constant 1.250000e-01 : f32
    %5 = vector.broadcast %cst_4 : f32 to vector<1x128xf32>
    %6 = arith.mulf %4, %5 : vector<1x128xf32>
    %7 = tpu.iota {dimensions = array<i32: 0>} : vector<8x128xi32>
    %c8_i32 = arith.constant 8 : i32
    %8 = vector.broadcast %c8_i32 : i32 to vector<8x128xi32>
    %9 = arith.cmpi slt, %7, %8 : vector<8x128xi32>
    %10 = vector.broadcast %6 : vector<1x128xf32> to vector<8x128xf32>
    %11 = arith.subf %2, %10 : vector<8x128xf32>
    %cst_5 = arith.constant 0.000000e+00 : f32
    %12 = vector.broadcast %cst_5 : f32 to vector<8x128xf32>
    %13 = arith.select %9, %11, %12 : vector<8x128xi1>, vector<8x128xf32>
    %14 = arith.mulf %13, %13 : vector<8x128xf32>
    %cst_6 = arith.constant dense<0.000000e+00> : vector<128xf32>
    %15 = vector.multi_reduction <add>, %14, %cst_6 [0] : vector<8x128xf32> to vector<128xf32>
    %16 = vector.shape_cast %15 : vector<128xf32> to vector<1x128xf32>
    %cst_7 = arith.constant 1.250000e-01 : f32
    %17 = vector.broadcast %cst_7 : f32 to vector<1x128xf32>
    %18 = arith.mulf %16, %17 : vector<1x128xf32>
    %c0_8 = arith.constant 0 : index
    %c0_9 = arith.constant 0 : index
    %19 = vector.load %arg2[%c0_8, %c0_9] : memref<1x128xf32, #tpu.memory_space<vmem>>, vector<1x128xf32>
    %cst_10 = arith.constant 9.99999974E-6 : f32
    %20 = vector.broadcast %cst_10 : f32 to vector<1x128xf32>
    %21 = arith.addf %18, %20 : vector<1x128xf32>
    %22 = math.rsqrt %21 : vector<1x128xf32>
    %23 = arith.mulf %19, %22 : vector<1x128xf32>
    %c0_11 = arith.constant 0 : index
    %c0_12 = arith.constant 0 : index
    %24 = vector.load %arg3[%c0_11, %c0_12] : memref<1x128xf32, #tpu.memory_space<vmem>>, vector<1x128xf32>
    %25 = arith.mulf %6, %23 : vector<1x128xf32>
    %26 = arith.subf %24, %25 : vector<1x128xf32>
    %27 = vector.broadcast %23 : vector<1x128xf32> to vector<8x128xf32>
    %28 = arith.mulf %2, %27 : vector<8x128xf32>
    %29 = vector.broadcast %26 : vector<1x128xf32> to vector<8x128xf32>
    %30 = arith.addf %28, %29 : vector<8x128xf32>
    %cst_13 = arith.constant 0.000000e+00 : f32
    %31 = vector.broadcast %cst_13 : f32 to vector<8x128xf32>
    %32 = arith.cmpf oge, %30, %31 : vector<8x128xf32>
    %cst_14 = arith.constant 2.000000e-01 : f32
    %33 = vector.broadcast %cst_14 : f32 to vector<8x128xf32>
    %34 = arith.mulf %33, %30 : vector<8x128xf32>
    %35 = arith.select %32, %30, %34 : vector<8x128xi1>, vector<8x128xf32>
    %c0_15 = arith.constant 0 : index
    %c0_16 = arith.constant 0 : index
    %36 = vector.load %arg4[%c0_15, %c0_16] : memref<2x8xf32, #tpu.memory_space<vmem>>, vector<2x8xf32>
    %cst_17 = arith.constant dense<0.000000e+00> : vector<2x128xf32>
    %37 = tpu.matmul %36, %35, %cst_17 {dimension_numbers = #tpu.dot_dimension_numbers<[1], [0], [0], [1], [0, 0, 1, 1], [], []>} : vector<2x8xf32>, vector<8x128xf32>, vector<2x128xf32> -> vector<2x128xf32>
    %c0_18 = arith.constant 0 : index
    %c0_19 = arith.constant 0 : index
    %38 = vector.load %arg5[%c0_18, %c0_19] : memref<128x1xf32, #tpu.memory_space<vmem>>, vector<128x1xf32>
    %cst_20 = arith.constant dense<0.000000e+00> : vector<2x1xf32>
    %39 = tpu.matmul %37, %38, %cst_20 {dimension_numbers = #tpu.dot_dimension_numbers<[1], [0], [0], [1], [0, 0, 1, 1], [], []>} : vector<2x128xf32>, vector<128x1xf32>, vector<2x1xf32> -> vector<2x1xf32>
    %c0_21 = arith.constant 0 : index
    %c0_22 = arith.constant 0 : index
    %40 = vector.load %arg6[%c0_21, %c0_22] : memref<1x1xf32, #tpu.memory_space<vmem>>, vector<1x1xf32>
    %41 = vector.broadcast %40 : vector<1x1xf32> to vector<2x1xf32>
    %42 = arith.addf %39, %41 : vector<2x1xf32>
    %43 = arith.negf %42 : vector<2x1xf32>
    %44 = math.exp %43 : vector<2x1xf32>
    %cst_23 = arith.constant 1.000000e+00 : f32
    %45 = vector.broadcast %cst_23 : f32 to vector<2x1xf32>
    %46 = arith.addf %45, %44 : vector<2x1xf32>
    %47 = arith.divf %45, %46 : vector<2x1xf32>
    %c0_24 = arith.constant 0 : index
    %c0_25 = arith.constant 0 : index
    %48 = vector.load %arg7[%c0_24, %c0_25] : memref<2x1xf32, #tpu.memory_space<vmem>>, vector<2x1xf32>
    tpu.vector_store %arg7[%c0_24, %c0_25], %47 {strides = array<i32>} : memref<2x1xf32, #tpu.memory_space<vmem>>, vector<2x1xf32>,
    return
  }
}

</mosaic_0001>

<bundles_post_ra>
// kernel: discriminator_forward.3
= control target key start
LH: loop header
LB: loop body
LE: loop exit
PB: predicated region body
PF: predicated region fallthrough
CT: control target
= control target key end

     0   :  { %vm82_vm0 = vcmask 130048   ;;  %s853_s1 = inlined_call_operand.vmem [shape: bf16[16,128], index: 1, kind: input, shape index: {}]   ;;  %s854_s0 = inlined_call_operand.vmem [shape: bf16[128,16], index: 0, kind: input, shape index: {}]   ;;  %s855_s2 = inlined_call_operand.vmem [shape: f32[1,128], index: 2, kind: input, shape index: {}]   ;;  %s856_s3 = inlined_call_operand.vmem [shape: f32[1,128], index: 3, kind: input, shape index: {}]   ;;  %s857_s4 = inlined_call_operand.vmem [shape: bf16[128,128], index: 4, kind: output, shape index: {}]  }
   0x1   :  { %v637_v0 = vld [vmem:[%s853_s1] sm:$0xff]   ;;  %v639_v2 = vld [vmem:[%s854_s0 + $0x8] sm:$0xff]   ;;  %v640_v3 = vld [vmem:[%s854_s0 + $0x10] sm:$0xff]  }
   0x2   :  { %v638_v1 = vld [vmem:[%s854_s0] sm:$0xff]   ;;  %617 = vmatprep.subr.bf16.mxu0 %v637_v0  ;;  %635 = vmatprep.subr.bf16.mxu1 %v637_v0  ;;  %v643_v5 = vld [vmem:[%s854_s0 + $0x28] sm:$0xff]   ;;  %v644_v6 = vld [vmem:[%s854_s0 + $0x30] sm:$0xff]  }
   0x3   :  { %618 = vmatpush3.bf16.msra.mxu0 %v637_v0  ;;  %619 = vmatprep.mubr.msk.bf16.mxu0 %vm82_vm0, %v638_v1  ;;  %v642_v4 = vld [vmem:[%s854_s0 + $0x20] sm:$0xff]   ;;  %v641_v7 = vld [vmem:[%s854_s0 + $0x18] sm:$0xff]  }
   0x4   :  { %636 = vmatpush3.bf16.msra.mxu1 %v637_v0  ;;  %627 = vmatprep.mubr.msk.bf16.mxu1 %vm82_vm0, %v642_v4  ;;  %v645_v8 = vld [vmem:[%s854_s0 + $0x38] sm:$0xff]  }
   0x6   :  { %620 = vmatmul.mubr.msk.bf16.vlgmr.msra.gmra.mrb[0].mxu0 %vm82_vm0, %v639_v2 }
   0x7   :  { %623 = vmatprep.mubr.msk.bf16.mxu0 %vm82_vm0, %v640_v3  ;;  %628 = vmatmul.mubr.msk.bf16.vlgmr.msra.gmra.mrb[0].mxu1 %vm82_vm0, %v643_v5 }
   0x8   :  { %631 = vmatprep.mubr.msk.bf16.mxu1 %vm82_vm0, %v644_v6 }
   0xe   :  { %624 = vmatmul.mubr.msk.bf16.gmra.mrb[4].mxu0 %vm82_vm0, %v641_v7 }
   0xf   :  { %632 = vmatmul.mubr.msk.bf16.gmra.mrb[4].mxu1 %vm82_vm0, %v645_v8 }
  0xd9   :  { %v708_v9 = vpop.f32.mrb[0].mxu0 }
  0xda   :  { %v710_v10 = vpop.f32.mrb[1].mxu0  ;;  %v714_v12 = vpop.f32.mrb[0].mxu1 }
  0xdb   :  { %v712_v11 = vpop.f32.mrb[2].mxu0  ;;  %v718_v14 = vpop.f32.mrb[1].mxu1 }
  0xdc   :  { %v716_v13 = vpop.f32.mrb[3].mxu0  ;;  %v722_v16 = vpop.f32.mrb[2].mxu1 }
  0xdd   :  { %v204_v15 = vadd.f32 %v716_v13, %v710_v10  ;;  %v724_v17 = vpop.f32.mrb[3].mxu1 }
  0xdf   :  { %v205_v18 = vadd.f32 %v708_v9, %v204_v15 }
  0xe1   :  { %v727_v19 = vpop.f32.mrb[4].mxu0  ;;  %v206_v20 = vadd.f32 %v712_v11, %v205_v18 }
  0xe2   :  { %v730_v21 = vpop.f32.mrb[5].mxu0  ;;  %v735_v24 = vpop.f32.mrb[4].mxu1 }
  0xe3   :  { %v207_v22 = vadd.f32 %v206_v20, %v730_v21  ;;  %v733_v23 = vpop.f32.mrb[6].mxu0  ;;  %v739_v26 = vpop.f32.mrb[5].mxu1 }
  0xe4   :  { %v737_v25 = vpop.f32.mrb[7].mxu0  ;;  %v742_v28 = vpop.f32.mrb[6].mxu1 }
  0xe5   :  { %v208_v27 = vadd.f32 %v207_v22, %v737_v25  ;;  %v744_v29 = vpop.f32.mrb[7].mxu1 }
  0xe7   :  { %v209_v30 = vadd.f32 %v727_v19, %v208_v27 }
  0xe9   :  { %v210_v31 = vadd.f32 %v733_v23, %v209_v30 }
  0xeb   :  { %v211_v32 = vadd.f32 %v210_v31, %v718_v14 }
  0xed   :  { %v212_v33 = vadd.f32 %v211_v32, %v724_v17 }
  0xef   :  { %v213_v34 = vadd.f32 %v714_v12, %v212_v33 }
  0xf1   :  { %v214_v35 = vadd.f32 %v722_v16, %v213_v34 }
  0xf3   :  { %v215_v36 = vadd.f32 %v214_v35, %v739_v26 }
  0xf5   :  { %v216_v37 = vadd.f32 %v215_v36, %v744_v29 }
  0xf7   :  { %v217_v38 = vadd.f32 %v735_v24, %v216_v37 }
  0xf9   :  { %v218_v39 = vadd.f32 %v742_v28, %v217_v38 }
  0xfb   :  { %v219_v40 = vrot.slane %v218_v39, 4 }
  0xfd   :  { %v220_v41 = vadd.f32 %v219_v40, %v218_v39 }
  0xff   :  { %v221_v42 = vrot.slane %v220_v41, 2 }
 0x101   :  { %v222_v43 = vadd.f32 %v221_v42, %v220_v41 }
 0x103   :  { %v223_v44 = vrot.slane %v222_v43, 1 }
 0x105   :  { %v224_v45 = vadd.f32 %v223_v44, %v222_v43 }
 0x107   :  { %v756_v46 = vmul.f32 0.0078125, %v224_v45 }
 0x109   :  { %v259_v47 = vsub.f32 %v710_v10, %v756_v46  ;;  %v260_v48 = vsub.f32 %v716_v13, %v756_v46  ;;  %v261_v49 = vsub.f32 %v708_v9, %v756_v46  ;;  %v262_v50 = vsub.f32 %v712_v11, %v756_v46 }
 0x10a   :  { %v263_v51 = vsub.f32 %v730_v21, %v756_v46  ;;  %v264_v52 = vsub.f32 %v737_v25, %v756_v46  ;;  %v265_v53 = vsub.f32 %v727_v19, %v756_v46  ;;  %v266_v54 = vsub.f32 %v733_v23, %v756_v46 }
 0x10b   :  { %v267_v55 = vsub.f32 %v718_v14, %v756_v46  ;;  %v268_v56 = vsub.f32 %v724_v17, %v756_v46  ;;  %v269_v57 = vsub.f32 %v714_v12, %v756_v46  ;;  %v270_v58 = vsub.f32 %v722_v16, %v756_v46 }
 0x10c   :  { %v271_v59 = vsub.f32 %v739_v26, %v756_v46  ;;  %v272_v60 = vsub.f32 %v744_v29, %v756_v46  ;;  %v273_v61 = vsub.f32 %v735_v24, %v756_v46  ;;  %v274_v62 = vsub.f32 %v742_v28, %v756_v46 }
 0x10d   :  { %v291_v63 = vmul.f32 %v259_v47, %v259_v47  ;;  %v292_v0 = vmul.f32 %v260_v48, %v260_v48  ;;  %v293_v1 = vmul.f32 %v261_v49, %v261_v49  ;;  %v294_v3 = vmul.f32 %v262_v50, %v262_v50 }
 0x10e   :  { %v295_v5 = vmul.f32 %v263_v51, %v263_v51  ;;  %v296_v7 = vmul.f32 %v264_v52, %v264_v52  ;;  %v297_v15 = vmul.f32 %v265_v53, %v265_v53  ;;  %v298_v20 = vmul.f32 %v266_v54, %v266_v54 }
 0x10f   :  { %v307_v2 = vadd.f32 %v292_v0, %v291_v63  ;;  %v299_v27 = vmul.f32 %v267_v55, %v267_v55  ;;  %v300_v31 = vmul.f32 %v268_v56, %v268_v56  ;;  %v301_v33 = vmul.f32 %v269_v57, %v269_v57  ;;  %v329_v57 = vld [vmem:[%s855_s2] sm:$0x1] }
 0x110   :  { %v302_v35 = vmul.f32 %v270_v58, %v270_v58  ;;  %v303_v37 = vmul.f32 %v271_v59, %v271_v59  ;;  %v304_v39 = vmul.f32 %v272_v60, %v272_v60  ;;  %v305_v41 = vmul.f32 %v273_v61, %v273_v61  ;;  %v333_v61 = vld [vmem:[%s856_s3] sm:$0x1] }
 0x111   :  { %v308_v4 = vadd.f32 %v307_v2, %v293_v1  ;;  %v306_v43 = vmul.f32 %v274_v62, %v274_v62  ;;  %v337_v55 = vlaneseq }
 0x113   :  { %v309_v6 = vadd.f32 %v308_v4, %v294_v3  ;;  %v338_v56 = vshrl.u32 %v337_v55, 7 }
 0x115   :  { %v310_v8 = vadd.f32 %v309_v6, %v295_v5  ;;  %v339_v58 = vsub.s32 0, %v338_v56 }
 0x117   :  { %v311_v18 = vadd.f32 %v310_v8, %v296_v7 }
 0x119   :  { %v312_v22 = vadd.f32 %v311_v18, %v297_v15 }
 0x11b   :  { %v313_v30 = vadd.f32 %v312_v22, %v298_v20 }
 0x11d   :  { %v314_v32 = vadd.f32 %v313_v30, %v299_v27 }
 0x11f   :  { %v315_v34 = vadd.f32 %v314_v32, %v300_v31 }
 0x121   :  { %v316_v36 = vadd.f32 %v315_v34, %v301_v33 }
 0x123   :  { %v317_v38 = vadd.f32 %v316_v36, %v302_v35 }
 0x125   :  { %v318_v40 = vadd.f32 %v317_v38, %v303_v37 }
 0x127   :  { %v319_v42 = vadd.f32 %v318_v40, %v304_v39 }
 0x129   :  { %v320_v44 = vadd.f32 %v319_v42, %v305_v41 }
 0x12b   :  { %v321_v45 = vadd.f32 %v320_v44, %v306_v43 }
 0x12d   :  { %v322_v47 = vrot.slane %v321_v45, 4 }
 0x12f   :  { %v323_v48 = vadd.f32 %v322_v47, %v321_v45 }
 0x131   :  { %v324_v49 = vrot.slane %v323_v48, 2 }
 0x133   :  { %v325_v50 = vadd.f32 %v324_v49, %v323_v48 }
 0x135   :  { %v326_v51 = vrot.slane %v325_v50, 1 }
 0x137   :  { %v327_v52 = vadd.f32 %v326_v51, %v325_v50 }
 0x139   :  { %v328_v53 = vmul.f32 0.0078125, %v327_v52 }
 0x13b   :  { %v330_v54 = vadd.f32 1e-05, %v328_v53 }
 0x13d   :  { %646 = vrsqrt.f32 %v330_v54 }
 0x147   :  { %v647_v59 = vpop.eup %646 }
 0x148   :  { %v332_v60 = vmul.f32 %v647_v59, %v329_v57 }
 0x14a   :  { %v334_v62 = vmul.f32 %v332_v60, %v756_v46  ;;  %v340_v63 = vrot.slane %v332_v60, %v339_v58 }
 0x14c   :  { %v335_v0 = vsub.f32 %v333_v61, %v334_v62  ;;  %v342_v1 = vmul.f32 %v340_v63, %v710_v10  ;;  %v343_v2 = vmul.f32 %v340_v63, %v716_v13  ;;  %v344_v3 = vmul.f32 %v708_v9, %v340_v63 }
 0x14d   :  { %v345_v4 = vmul.f32 %v712_v11, %v340_v63  ;;  %v346_v5 = vmul.f32 %v340_v63, %v730_v21  ;;  %v347_v6 = vmul.f32 %v340_v63, %v737_v25  ;;  %v348_v7 = vmul.f32 %v727_v19, %v340_v63 }
 0x14e   :  { %v349_v8 = vmul.f32 %v733_v23, %v340_v63  ;;  %v350_v46 = vmul.f32 %v340_v63, %v718_v14  ;;  %v351_v15 = vmul.f32 %v340_v63, %v724_v17  ;;  %v352_v10 = vmul.f32 %v714_v12, %v340_v63 }
 0x14f   :  { %v353_v13 = vmul.f32 %v722_v16, %v340_v63  ;;  %v354_v9 = vmul.f32 %v340_v63, %v739_v26  ;;  %v355_v11 = vmul.f32 %v340_v63, %v744_v29  ;;  %v356_v21 = vmul.f32 %v735_v24, %v340_v63 }
 0x150   :  { %v357_v25 = vmul.f32 %v742_v28, %v340_v63  ;;  %v362_v18 = vrot.slane %v335_v0, %v339_v58 }
 0x152   :  { %v364_v19 = vadd.f32 %v362_v18, %v342_v1  ;;  %v365_v20 = vadd.f32 %v362_v18, %v343_v2  ;;  %v366_v23 = vadd.f32 %v362_v18, %v344_v3  ;;  %v367_v22 = vadd.f32 %v362_v18, %v345_v4 }
 0x153   :  { %v368_v14 = vadd.f32 %v362_v18, %v346_v5  ;;  %v369_v27 = vadd.f32 %v362_v18, %v347_v6  ;;  %v370_v17 = vadd.f32 %v362_v18, %v348_v7  ;;  %v371_v30 = vadd.f32 %v362_v18, %v349_v8 }
 0x154   :  { %v372_v12 = vadd.f32 %v362_v18, %v350_v46  ;;  %v373_v31 = vadd.f32 %v362_v18, %v351_v15  ;;  %v374_v16 = vadd.f32 %v362_v18, %v352_v10  ;;  %v375_v32 = vadd.f32 %v362_v18, %v353_v13 }
 0x155   :  { %v376_v26 = vadd.f32 %v362_v18, %v354_v9  ;;  %v377_v33 = vadd.f32 %v362_v18, %v355_v11  ;;  %v378_v29 = vadd.f32 %v362_v18, %v356_v21  ;;  %v379_v34 = vadd.f32 %v362_v18, %v357_v25 }
 0x156   :  { %vm380_vm1 = vcmp.ge.f32.partialorder %v364_v19, 0.0  ;;  %vm381_vm2 = vcmp.ge.f32.partialorder %v365_v20, 0.0  ;;  %vm382_vm3 = vcmp.ge.f32.partialorder %v366_v23, 0.0  ;;  %vm383_vm4 = vcmp.ge.f32.partialorder %v367_v22, 0.0 }
 0x157   :  { %vm384_vm5 = vcmp.ge.f32.partialorder %v368_v14, 0.0  ;;  %vm385_vm6 = vcmp.ge.f32.partialorder %v369_v27, 0.0  ;;  %vm386_vm7 = vcmp.ge.f32.partialorder %v370_v17, 0.0  ;;  %vm387_vm8 = vcmp.ge.f32.partialorder %v371_v30, 0.0 }
 0x158   :  { %vm388_vm9 = vcmp.ge.f32.partialorder %v372_v12, 0.0  ;;  %vm389_vm10 = vcmp.ge.f32.partialorder %v373_v31, 0.0  ;;  %vm390_vm11 = vcmp.ge.f32.partialorder %v374_v16, 0.0  ;;  %vm391_vm12 = vcmp.ge.f32.partialorder %v375_v32, 0.0 }
 0x159   :  { %vm392_vm13 = vcmp.ge.f32.partialorder %v376_v26, 0.0  ;;  %vm393_vm14 = vcmp.ge.f32.partialorder %v377_v33, 0.0  ;;  %vm394_vm15 = vcmp.ge.f32.partialorder %v378_v29, 0.0  ;;  %vm395_vm0 = vcmp.ge.f32.partialorder %v379_v34, 0.0 }
 0x15a   :  { %v396_v24 = vmul.f32 0.2, %v364_v19  ;;  %v397_v28 = vmul.f32 0.2, %v365_v20  ;;  %v398_v35 = vmul.f32 0.2, %v366_v23 }
 0x15b   :  { %v399_v36 = vmul.f32 0.2, %v367_v22  ;;  %v400_v37 = vmul.f32 0.2, %v368_v14  ;;  %v401_v38 = vmul.f32 0.2, %v369_v27 }
 0x15c   :  { %v402_v39 = vmul.f32 0.2, %v370_v17  ;;  %v403_v40 = vmul.f32 0.2, %v371_v30  ;;  %v404_v41 = vmul.f32 0.2, %v372_v12  ;;  %v412_v42 = vsel %vm380_vm1, %v364_v19, %v396_v24 }
 0x15d   :  { %v405_v43 = vmul.f32 0.2, %v373_v31  ;;  %v406_v44 = vmul.f32 0.2, %v374_v16  ;;  %v407_v45 = vmul.f32 0.2, %v375_v32  ;;  %v413_v47 = vsel %vm381_vm2, %v365_v20, %v397_v28 }
 0x15e   :  { %v408_v48 = vmul.f32 0.2, %v376_v26  ;;  %v409_v49 = vmul.f32 0.2, %v377_v33  ;;  %v410_v50 = vmul.f32 0.2, %v378_v29  ;;  %v414_v51 = vsel %vm382_vm3, %v366_v23, %v398_v35 }
 0x15f   :  { %v411_v52 = vmul.f32 0.2, %v379_v34  ;;  %v415_v53 = vsel %vm383_vm4, %v367_v22, %v399_v36  ;;  %v416_v54 = vsel %vm384_vm5, %v368_v14, %v400_v37  ;;  %v417_v55 = vsel %vm385_vm6, %v369_v27, %v401_v38 }
 0x160   :  { %v418_v56 = vsel %vm386_vm7, %v370_v17, %v402_v39  ;;  %v419_v57 = vsel %vm387_vm8, %v371_v30, %v403_v40  ;;  %v420_v58 = vsel %vm388_vm9, %v372_v12, %v404_v41  ;;  %v421_v59 = vsel %vm389_vm10, %v373_v31, %v405_v43 }
 0x161   :  { %v422_v60 = vsel %vm390_vm11, %v374_v16, %v406_v44  ;;  %v423_v61 = vsel %vm391_vm12, %v375_v32, %v407_v45  ;;  %v424_v62 = vsel %vm392_vm13, %v376_v26, %v408_v48  ;;  %v425_v63 = vsel %vm393_vm14, %v377_v33, %v409_v49 }
 0x162   :  { %v426_v0 = vsel %vm394_vm15, %v378_v29, %v410_v50  ;;  %v427_v1 = vsel %vm395_vm0, %v379_v34, %v411_v52  ;;  %v564_v2 = vpack.c.bf16 %v413_v47, %v412_v42  ;;  %v569_v3 = vpack.c.bf16 %v415_v53, %v414_v51 }
 0x163   :  { %v574_v4 = vpack.c.bf16 %v417_v55, %v416_v54  ;;  %v579_v5 = vpack.c.bf16 %v419_v57, %v418_v56  ;;  %v584_v6 = vpack.c.bf16 %v421_v59, %v420_v58  ;;  %v589_v7 = vpack.c.bf16 %v423_v61, %v422_v60 }
 0x164   :  { %565 = vst [vmem:[%s857_s4] sm:$0xff] %v564_v2   ;;  %601 = vst [vmem:[%s857_s4 + $0x8] sm:$0xff] %v569_v3   ;;  %v594_v8 = vpack.c.bf16 %v425_v63, %v424_v62  ;;  %v599_v46 = vpack.c.bf16 %v427_v1, %v426_v0 }
 0x165   :  { %602 = vst [vmem:[%s857_s4 + $0x10] sm:$0xff] %v574_v4   ;;  %603 = vst [vmem:[%s857_s4 + $0x18] sm:$0xff] %v579_v5  }
 0x166   :  { %604 = vst [vmem:[%s857_s4 + $0x20] sm:$0xff] %v584_v6   ;;  %605 = vst [vmem:[%s857_s4 + $0x28] sm:$0xff] %v589_v7  }
 0x167   :  { %606 = vst [vmem:[%s857_s4 + $0x30] sm:$0xff] %v594_v8   ;;  %607 = vst [vmem:[%s857_s4 + $0x38] sm:$0xff] %v599_v46  }

// kernel: discriminator_forward.4
= control target key start
LH: loop header
LB: loop body
LE: loop exit
PB: predicated region body
PF: predicated region fallthrough
CT: control target
= control target key end

     0   :  { %v196_v43 = vlaneseq  ;;  %s389_s1 = inlined_call_operand.vmem [shape: bf16[128,128], index: 1, kind: input, shape index: {}]   ;;  %s390_s0 = inlined_call_operand.vmem [shape: bf16[32,128], index: 0, kind: input, shape index: {}]   ;;  %s391_s2 = inlined_call_operand.vmem [shape: f32[1,128], index: 2, kind: input, shape index: {}]   ;;  %s392_s3 = inlined_call_operand.vmem [shape: f32[1,128], index: 3, kind: input, shape index: {}]   ;;  %s393_s4 = inlined_call_operand.vmem [shape: bf16[32,128], index: 4, kind: output, shape index: {}]  }
   0x1   :  { %v310_v0 = vld [vmem:[%s389_s1] sm:$0xff]   ;;  %v311_v1 = vld [vmem:[%s389_s1 + $0x8] sm:$0xff]   ;;  %v312_v2 = vld [vmem:[%s389_s1 + $0x10] sm:$0xff]  }
   0x2   :  { %290 = vmatprep.subr.bf16.mxu0 %v310_v0  ;;  %v313_v3 = vld [vmem:[%s389_s1 + $0x18] sm:$0xff]   ;;  %v318_v4 = vld [vmem:[%s390_s0] sm:$0xff]   ;;  %v315_v6 = vld [vmem:[%s389_s1 + $0x28] sm:$0xff]   ;;  %v197_v44 = vshrl.u32 %v196_v43, 7 }
   0x3   :  { %291 = vmatpush3.bf16.msra.mxu0 %v310_v0  ;;  %306 = vmatprep.mubr.bf16.mxu0 %v318_v4  ;;  %v314_v5 = vld [vmem:[%s389_s1 + $0x20] sm:$0xff]   ;;  %v316_v7 = vld [vmem:[%s389_s1 + $0x30] sm:$0xff]   ;;  %v317_v8 = vld [vmem:[%s389_s1 + $0x38] sm:$0xff]  }
   0x4   :  { %292 = vmatprep.subr.bf16.mxu0 %v311_v1  ;;  %v319_v9 = vld [vmem:[%s390_s0 + $0x8] sm:$0xff]   ;;  %v188_v45 = vld [vmem:[%s391_s2] sm:$0x1]  ;;  %v198_v46 = vsub.s32 0, %v197_v44 }
   0x5   :  { %v192_v49 = vld [vmem:[%s392_s3] sm:$0x1] }
   0x7   :  { %293 = vmatpush3.bf16.msra.mxu0 %v311_v1 }
   0x8   :  { %294 = vmatprep.subr.bf16.mxu0 %v312_v2 }
   0xb   :  { %295 = vmatpush3.bf16.msra.mxu0 %v312_v2 }
   0xc   :  { %296 = vmatprep.subr.bf16.mxu0 %v313_v3 }
   0xf   :  { %297 = vmatpush3.bf16.msra.mxu0 %v313_v3 }
  0x10   :  { %298 = vmatprep.subr.bf16.mxu0 %v314_v5 }
  0x13   :  { %299 = vmatpush3.bf16.msra.mxu0 %v314_v5 }
  0x14   :  { %300 = vmatprep.subr.bf16.mxu0 %v315_v6 }
  0x17   :  { %301 = vmatpush3.bf16.msra.mxu0 %v315_v6 }
  0x18   :  { %302 = vmatprep.subr.bf16.mxu0 %v316_v7 }
  0x1b   :  { %303 = vmatpush3.bf16.msra.mxu0 %v316_v7 }
  0x1c   :  { %304 = vmatprep.subr.bf16.mxu0 %v317_v8 }
  0x1f   :  { %305 = vmatpush3.bf16.msra.mxu0 %v317_v8 }
  0x22   :  { %307 = vmatmul.mubr.bf16.vlgmr.msra.gmra.mrb[0].mxu0 %v319_v9 }
  0xf5   :  { %v308_v10 = vpop.f32.mrb[0].mxu0 }
  0xf6   :  { %v132_v11 = vpop.f32.mrb[1].mxu0 }
  0xf7   :  { %v309_v12 = vpop.f32.mrb[2].mxu0 }
  0xf8   :  { %v135_v13 = vpop.f32.mrb[3].mxu0 }
  0xf9   :  { %v147_v14 = vadd.f32 %v135_v13, %v132_v11 }
  0xfb   :  { %v148_v15 = vadd.f32 %v308_v10, %v147_v14 }
  0xfd   :  { %v149_v16 = vadd.f32 %v309_v12, %v148_v15 }
  0xff   :  { %v150_v17 = vrot.slane %v149_v16, 4 }
 0x101   :  { %v151_v18 = vadd.f32 %v150_v17, %v149_v16 }
 0x103   :  { %v152_v19 = vrot.slane %v151_v18, 2 }
 0x105   :  { %v153_v20 = vadd.f32 %v152_v19, %v151_v18 }
 0x107   :  { %v154_v21 = vrot.slane %v153_v20, 1 }
 0x109   :  { %v155_v22 = vadd.f32 %v154_v21, %v153_v20 }
 0x10b   :  { %v156_v23 = vmul.f32 0.03125, %v155_v22 }
 0x10d   :  { %v166_v24 = vsub.f32 %v132_v11, %v156_v23  ;;  %v167_v25 = vsub.f32 %v135_v13, %v156_v23  ;;  %v168_v26 = vsub.f32 %v308_v10, %v156_v23  ;;  %v169_v27 = vsub.f32 %v309_v12, %v156_v23 }
 0x10f   :  { %v174_v28 = vmul.f32 %v166_v24, %v166_v24  ;;  %v175_v29 = vmul.f32 %v167_v25, %v167_v25  ;;  %v176_v30 = vmul.f32 %v168_v26, %v168_v26  ;;  %v177_v32 = vmul.f32 %v169_v27, %v169_v27 }
 0x111   :  { %v178_v31 = vadd.f32 %v175_v29, %v174_v28 }
 0x113   :  { %v179_v33 = vadd.f32 %v178_v31, %v176_v30 }
 0x115   :  { %v180_v34 = vadd.f32 %v179_v33, %v177_v32 }
 0x117   :  { %v181_v35 = vrot.slane %v180_v34, 4 }
 0x119   :  { %v182_v36 = vadd.f32 %v181_v35, %v180_v34 }
 0x11b   :  { %v183_v37 = vrot.slane %v182_v36, 2 }
 0x11d   :  { %v184_v38 = vadd.f32 %v183_v37, %v182_v36 }
 0x11f   :  { %v185_v39 = vrot.slane %v184_v38, 1 }
 0x121   :  { %v186_v40 = vadd.f32 %v185_v39, %v184_v38 }
 0x123   :  { %v187_v41 = vmul.f32 0.03125, %v186_v40 }
 0x125   :  { %v189_v42 = vadd.f32 1e-05, %v187_v41 }
 0x127   :  { %320 = vrsqrt.f32 %v189_v42 }
 0x131   :  { %v321_v47 = vpop.eup %320 }
 0x132   :  { %v191_v48 = vmul.f32 %v321_v47, %v188_v45 }
 0x134   :  { %v193_v50 = vmul.f32 %v191_v48, %v156_v23  ;;  %v199_v51 = vrot.slane %v191_v48, %v198_v46 }
 0x136   :  { %v194_v52 = vsub.f32 %v192_v49, %v193_v50  ;;  %v201_v53 = vmul.f32 %v199_v51, %v132_v11  ;;  %v202_v54 = vmul.f32 %v199_v51, %v135_v13  ;;  %v203_v55 = vmul.f32 %v308_v10, %v199_v51 }
 0x137   :  { %v204_v56 = vmul.f32 %v309_v12, %v199_v51 }
 0x138   :  { %v209_v57 = vrot.slane %v194_v52, %v198_v46 }
 0x13a   :  { %v211_v58 = vadd.f32 %v209_v57, %v201_v53  ;;  %v212_v59 = vadd.f32 %v209_v57, %v202_v54  ;;  %v213_v60 = vadd.f32 %v209_v57, %v203_v55  ;;  %v214_v61 = vadd.f32 %v209_v57, %v204_v56 }
 0x13c   :  { %vm215_vm0 = vcmp.ge.f32.partialorder %v211_v58, 0.0  ;;  %vm216_vm1 = vcmp.ge.f32.partialorder %v212_v59, 0.0  ;;  %vm217_vm2 = vcmp.ge.f32.partialorder %v213_v60, 0.0  ;;  %vm218_vm3 = vcmp.ge.f32.partialorder %v214_v61, 0.0 }
 0x13d   :  { %v219_v62 = vmul.f32 0.2, %v211_v58  ;;  %v220_v63 = vmul.f32 0.2, %v212_v59  ;;  %v221_v0 = vmul.f32 0.2, %v213_v60 }
 0x13e   :  { %v222_v1 = vmul.f32 0.2, %v214_v61 }
 0x13f   :  { %v223_v2 = vsel %vm215_vm0, %v211_v58, %v219_v62  ;;  %v224_v3 = vsel %vm216_vm1, %v212_v59, %v220_v63  ;;  %v225_v4 = vsel %vm217_vm2, %v213_v60, %v221_v0 }
 0x140   :  { %v226_v5 = vsel %vm218_vm3, %v214_v61, %v222_v1  ;;  %v272_v6 = vpack.c.bf16 %v224_v3, %v223_v2 }
 0x141   :  { %v277_v7 = vpack.c.bf16 %v226_v5, %v225_v4 }
 0x142   :  { %273 = vst [vmem:[%s393_s4] sm:$0xff] %v272_v6  }
 0x143   :  { %279 = vst [vmem:[%s393_s4 + $0x8] sm:$0xff] %v277_v7  }

// kernel: discriminator_forward.5
= control target key start
LH: loop header
LB: loop body
LE: loop exit
PB: predicated region body
PF: predicated region fallthrough
CT: control target
= control target key end

     0   :  { %v582_v19 = vmov 0.0   ;;  %vm583_vm0 = vmmov 0   ;;  %v233_v42 = vlaneseq  ;;  %vm250_vm2 = vcmask 64512   ;;  %s741_s1 = inlined_call_operand.vmem [shape: bf16[256,128], index: 1, kind: input, shape index: {}]   ;;  %s742_s0 = inlined_call_operand.vmem [shape: bf16[8,256], index: 0, kind: input, shape index: {}]   ;;  %s743_s2 = inlined_call_operand.vmem [shape: f32[1,128], index: 2, kind: input, shape index: {}]   ;;  %s744_s3 = inlined_call_operand.vmem [shape: f32[1,128], index: 3, kind: input, shape index: {}]   ;;  %s745_s5 = inlined_call_operand.vmem [shape: f32[128,1], index: 5, kind: input, shape index: {}]   ;;  %s746_s4 = inlined_call_operand.vmem [shape: f32[2,8], index: 4, kind: input, shape index: {}]   ;;  %s747_s6 = inlined_call_operand.<no memory space> [shape: f32[1,1], index: 6, kind: input, shape index: {}]   ;;  %s748_s7 = inlined_call_operand.vmem [shape: f32[2,1], index: 7, kind: output, shape index: {}]  }
   0x1   :  { %v558_v0 = vld [vmem:[%s741_s1 + $0x40] sm:$0xff]   ;;  %v560_v2 = vld [vmem:[%s741_s1 + $0x48] sm:$0xff]   ;;  %v562_v4 = vld [vmem:[%s741_s1 + $0x50] sm:$0xff]   ;;  %491 = vmatprep.subr.mxu1 %v582_v19  ;;  %493 = vmatprep.mubr.msk.f32.mxu1 %vm583_vm0, %v582_v19  ;;  %v584_v63 = vmov 0.0|0.0   ;;  %vm423_vm3 = vcmask 1024  }
   0x2   :  { %v559_v1 = vld [vmem:[%s741_s1] sm:$0xff]   ;;  %450 = vmatprep.subr.bf16.mxu0 %v558_v0  ;;  %v561_v3 = vld [vmem:[%s741_s1 + $0x8] sm:$0xff]   ;;  %v563_v5 = vld [vmem:[%s741_s1 + $0x10] sm:$0xff]   ;;  %v234_v43 = vshrl.u32 %v233_v42, 7 }
   0x3   :  { %451 = vmatpush3.bf16.msra.mxu0 %v559_v1  ;;  %v564_v6 = vld [vmem:[%s741_s1 + $0x58] sm:$0xff]   ;;  %v566_v8 = vld [vmem:[%s741_s1 + $0x60] sm:$0xff]   ;;  %v568_v10 = vld [vmem:[%s741_s1 + $0x68] sm:$0xff]  }
   0x4   :  { %452 = vmatprep.subr.bf16.mxu0 %v560_v2  ;;  %v565_v7 = vld [vmem:[%s741_s1 + $0x18] sm:$0xff]   ;;  %v567_v9 = vld [vmem:[%s741_s1 + $0x20] sm:$0xff]   ;;  %v569_v13 = vld [vmem:[%s741_s1 + $0x28] sm:$0xff]   ;;  %v235_v45 = vsub.s32 0, %v234_v43 }
   0x5   :  { %v29_v11 = vld [vmem:[%s742_s0] sm:$0xff]  ;;  %v570_v14 = vld [vmem:[%s741_s1 + $0x70] sm:$0xff]   ;;  %v572_v16 = vld [vmem:[%s741_s1 + $0x78] sm:$0xff]  }
   0x6   :  { %v430_v12 = vcombine.high %v29_v11, %v29_v11  ;;  %v571_v15 = vld [vmem:[%s741_s1 + $0x30] sm:$0xff]   ;;  %v573_v17 = vld [vmem:[%s741_s1 + $0x38] sm:$0xff]   ;;  %v429_v18 = vcombine.low %v29_v11, %v29_v11  ;;  %v225_v44 = vld [vmem:[%s743_s2] sm:$0x1] }
   0x7   :  { %453 = vmatpush3.bf16.msra.mxu0 %v561_v3  ;;  %v229_v48 = vld [vmem:[%s744_s3] sm:$0x1]  ;;  %v325_v56 = vld [vmem:[%s745_s5 + $0x8] sm:$0xff]  ;;  %v326_v61 = vld [vmem:[%s745_s5 + $0x10] sm:$0xff] }
   0x8   :  { %454 = vmatprep.subr.bf16.mxu0 %v562_v4  ;;  %197 = vmatprep.mubr.bf16.mxu0 %v430_v12  ;;  %v324_v55 = vld [vmem:[%s745_s5] sm:$0xff]  ;;  %v327_v62 = vld [vmem:[%s745_s5 + $0x18] sm:$0xff]  ;;  %v329_v2 = vld [vmem:[%s745_s5 + $0x28] sm:$0xff] }
   0x9   :  { %v249_v58 = vld [vmem:[%s746_s4] sm:$0x3]  ;;  %v532_v59 = vpack.c.bf16 %v325_v56, %v324_v55  ;;  %v535_v0 = vpack.c.bf16 %v327_v62, %v326_v61  ;;  %v330_v4 = vld [vmem:[%s745_s5 + $0x30] sm:$0xff]  ;;  %v335_v11 = vld [vmem:[%s745_s5 + $0x58] sm:$0xff] }
   0xa   :  { %v328_v1 = vld [vmem:[%s745_s5 + $0x20] sm:$0xff] }
   0xb   :  { %455 = vmatpush3.bf16.msra.mxu0 %v563_v5  ;;  %v538_v3 = vpack.c.bf16 %v329_v2, %v328_v1  ;;  %v331_v5 = vld [vmem:[%s745_s5 + $0x38] sm:$0xff] }
   0xc   :  { %456 = vmatprep.subr.bf16.mxu0 %v564_v6  ;;  %v541_v6 = vpack.c.bf16 %v331_v5, %v330_v4 }
   0xf   :  { %457 = vmatpush3.bf16.msra.mxu0 %v565_v7  ;;  %v332_v7 = vld [vmem:[%s745_s5 + $0x40] sm:$0xff] }
  0x10   :  { %458 = vmatprep.subr.bf16.mxu0 %v566_v8  ;;  %v333_v8 = vld [vmem:[%s745_s5 + $0x48] sm:$0xff] }
  0x13   :  { %459 = vmatpush3.bf16.msra.mxu0 %v567_v9  ;;  %v544_v9 = vpack.c.bf16 %v333_v8, %v332_v7 }
  0x14   :  { %460 = vmatprep.subr.bf16.mxu0 %v568_v10  ;;  %v334_v10 = vld [vmem:[%s745_s5 + $0x50] sm:$0xff] }
  0x15   :  { %v547_v12 = vpack.c.bf16 %v335_v11, %v334_v10 }
  0x17   :  { %461 = vmatpush3.bf16.msra.mxu0 %v569_v13  ;;  %v336_v13 = vld [vmem:[%s745_s5 + $0x60] sm:$0xff] }
  0x18   :  { %462 = vmatprep.subr.bf16.mxu0 %v570_v14  ;;  %v337_v14 = vld [vmem:[%s745_s5 + $0x68] sm:$0xff] }
  0x1b   :  { %463 = vmatpush3.bf16.msra.mxu0 %v571_v15  ;;  %v550_v15 = vpack.c.bf16 %v337_v14, %v336_v13 }
  0x1c   :  { %464 = vmatprep.subr.bf16.mxu0 %v572_v16  ;;  %v338_v16 = vld [vmem:[%s745_s5 + $0x70] sm:$0xff] }
  0x1f   :  { %465 = vmatpush3.bf16.msra.mxu0 %v573_v17  ;;  %v339_v17 = vld [vmem:[%s745_s5 + $0x78] sm:$0xff] }
  0x22   :  { %198 = vmatmul.mubr.bf16.vlgmr.msra.gmra.mrb[0].mxu0 %v429_v18  ;;  %v553_v18 = vpack.c.bf16 %v339_v17, %v338_v16 }
  0xf5   :  { %v466_v20 = vpop.f32.mrb[0].mxu0 }
  0xf6   :  { %v467_v21 = vpop.f32.mrb[1].mxu0 }
  0xf7   :  { %v468_v22 = vadd.f32 %v467_v21, %v466_v20  ;;  %v469_v23 = vpop.f32.mrb[2].mxu0 }
  0xf8   :  { %v470_v24 = vpop.f32.mrb[3].mxu0 }
  0xf9   :  { %v205_v25 = vrot.slane %v468_v22, 4 }
  0xfb   :  { %v206_v26 = vadd.f32 %v468_v22, %v205_v25 }
  0xfd   :  { %v207_v27 = vrot.slane %v206_v26, 2 }
  0xff   :  { %v208_v28 = vadd.f32 %v207_v27, %v206_v26 }
 0x101   :  { %v209_v29 = vrot.slane %v208_v28, 1 }
 0x103   :  { %v210_v30 = vadd.f32 %v209_v29, %v208_v28 }
 0x105   :  { %v211_v31 = vmul.f32 0.125, %v210_v30 }
 0x107   :  { %v215_v32 = vsub.f32 %v468_v22, %v211_v31 }
 0x109   :  { %v217_v33 = vmul.f32 %v215_v32, %v215_v32 }
 0x10b   :  { %v218_v34 = vrot.slane %v217_v33, 4 }
 0x10d   :  { %v219_v35 = vadd.f32 %v218_v34, %v217_v33 }
 0x10f   :  { %v220_v36 = vrot.slane %v219_v35, 2 }
 0x111   :  { %v221_v37 = vadd.f32 %v220_v36, %v219_v35 }
 0x113   :  { %v222_v38 = vrot.slane %v221_v37, 1 }
 0x115   :  { %v223_v39 = vadd.f32 %v222_v38, %v221_v37 }
 0x117   :  { %v224_v40 = vmul.f32 0.125, %v223_v39 }
 0x119   :  { %v226_v41 = vadd.f32 1e-05, %v224_v40 }
 0x11b   :  { %576 = vrsqrt.f32 %v226_v41 }
 0x125   :  { %v577_v46 = vpop.eup %576 }
 0x126   :  { %v228_v47 = vmul.f32 %v577_v46, %v225_v44 }
 0x128   :  { %v230_v49 = vmul.f32 %v228_v47, %v211_v31  ;;  %v236_v50 = vrot.slane %v228_v47, %v235_v45 }
 0x12a   :  { %v231_v51 = vsub.f32 %v229_v48, %v230_v49  ;;  %v238_v52 = vmul.f32 %v468_v22, %v236_v50 }
 0x12c   :  { %v243_v53 = vrot.slane %v231_v51, %v235_v45 }
 0x12e   :  { %v245_v54 = vadd.f32 %v243_v53, %v238_v52 }
 0x130   :  { %vm246_vm1 = vcmp.ge.f32.partialorder %v245_v54, 0.0  ;;  %v247_v57 = vmul.f32 0.2, %v245_v54 }
 0x132   :  { %v248_v60 = vsel %vm246_vm1, %v245_v54, %v247_v57 }
 0x133   :  { %492 = vmatpush3.msra.mxu1 %v248_v60 }
 0x134   :  { %494 = vmatmul.mubr.msk.f32.vlgmr.msra.gmra.mrb[0].mxu1 %vm250_vm2, %v249_v58  ;;  %531 = vmatprep.subr.bf16.mxu1 %v584_v63 }
 0x135   :  { %533 = vmatpush3.bf16.msra.mxu1 %v532_v59  ;;  %528 = vmatprep.mubr.msk.f32.mxu1 %vm583_vm0, %v582_v19  ;;  %v12_v19 = vstv %s747_s6 }
 0x136   :  { %534 = vmatprep.subr.bf16.mxu1 %v584_v63  ;;  %13 = vst [vmem:[#allocation2] sm:$0x1] %v12_v19 }
 0x139   :  { %536 = vmatpush3.bf16.msra.mxu1 %v535_v0 }
 0x13a   :  { %537 = vmatprep.subr.bf16.mxu1 %v584_v63 }
 0x13d   :  { %539 = vmatpush3.bf16.msra.mxu1 %v538_v3  ;;  %v448_v22 = vld [vmem:[#allocation2] ss:$0 sm:$0xff] }
 0x13e   :  { %540 = vmatprep.subr.bf16.mxu1 %v584_v63 }
 0x141   :  { %542 = vmatpush3.bf16.msra.mxu1 %v541_v6 }
 0x142   :  { %543 = vmatprep.subr.bf16.mxu1 %v584_v63 }
 0x145   :  { %545 = vmatpush3.bf16.msra.mxu1 %v544_v9 }
 0x146   :  { %546 = vmatprep.subr.bf16.mxu1 %v584_v63 }
 0x149   :  { %548 = vmatpush3.bf16.msra.mxu1 %v547_v12 }
 0x14a   :  { %549 = vmatprep.subr.bf16.mxu1 %v584_v63 }
 0x14d   :  { %551 = vmatpush3.bf16.msra.mxu1 %v550_v15 }
 0x14e   :  { %552 = vmatprep.subr.bf16.mxu1 %v584_v63 }
 0x151   :  { %554 = vmatpush3.bf16.msra.mxu1 %v553_v18 }
 0x207   :  { %v320_v20 = vpop.f32.mrb[0].mxu1 }
 0x208   :  { %v495_v21 = vpop.f32.mrb[1].mxu1  ;;  %529 = vmatmul.mubr.f32.vlgmr.msra.gmra.mrb[2].mxu1 %v320_v20 }
 0x2db   :  { %v413_v23 = vpop.f32.mrb[2].mxu1 }
 0x2dc   :  { %v414_v24 = vadd.f32 %v448_v22, %v413_v23  ;;  %v530_v25 = vpop.f32.mrb[3].mxu1 }
 0x2de   :  { %v449_v26 = vmul.f32 -1.442695, %v414_v24 }
 0x2e0   :  { %578 = vpow2.f32 %v449_v26 }
 0x2ea   :  { %v579_v27 = vpop.eup %578 }
 0x2eb   :  { %v420_v28 = vadd.f32 1.0, %v579_v27 }
 0x2ed   :  { %580 = vrcp.f32 %v420_v28 }
 0x2f7   :  { %v581_v29 = vpop.eup %580 }
 0x2f8   :  { %424 = vst.msk [vmem:[%s748_s7] sm:$0x3] %vm423_vm3, %v581_v29 }

</bundles_post_ra>
